<compile_context>
chip_gen: v7x
topology: tpu7x:2x2x1
jax: 0.10.0
libtpu: 0.0.40
codegen_flags: <defaults>
</compile_context>

<pallas_src>
import jax
import jax.numpy as jnp
from jax.experimental import pallas as pl
from jax.experimental.pallas import tpu as pltpu

EPSILON = 1e-5
_TARGET_BLOCK_BYTES = 6 * 1024 * 1024  # per pipelined input block (x2 for double buffer)


def _stat_pool_kernel(seq_ref, x_ref, mean_ref, std_ref, s1_ref, s2_ref):
    b = pl.program_id(0)        # batch-block index ("parallel")
    kt = pl.program_id(1)       # time-tile index   ("arbitrary" reduction axis)
    BB, TT, D = x_ref.shape

    @pl.when(kt == 0)
    def _init():
        s1_ref[...] = jnp.zeros_like(s1_ref)
        s2_ref[...] = jnp.zeros_like(s2_ref)

    # Local time index within this tile. Compare against (length - tile_offset)
    # so the offset add stays on the scalar unit, not a full (TT, D) vector add.
    t_local = jax.lax.broadcasted_iota(jnp.int32, (TT, D), 0)
    t_base = kt * TT

    for i in range(BB):                         # BB is small & static -> unrolled
        length_i = seq_ref[b * BB + i]          # scalar length from SMEM
        xm = jnp.where(t_local < (length_i - t_base),
                       x_ref[i].astype(jnp.float32), 0.0)
        s1_ref[pl.ds(i, 1), :] += jnp.sum(xm, axis=0, keepdims=True)
        s2_ref[pl.ds(i, 1), :] += jnp.sum(xm * xm, axis=0, keepdims=True)

    @pl.when(kt == pl.num_programs(1) - 1)
    def _finalize():
        for i in range(BB):
            len_f = seq_ref[b * BB + i].astype(jnp.float32)
            s1 = s1_ref[pl.ds(i, 1), :]
            s2 = s2_ref[pl.ds(i, 1), :]
            mean = s1 / len_f
            var = jnp.maximum(s2 / len_f - mean * mean, 0.0)
            std = jnp.sqrt(var + EPSILON)
            mean_ref[pl.ds(i, 1), :] = mean.astype(mean_ref.dtype)
            std_ref[pl.ds(i, 1), :] = std.astype(std_ref.dtype)


def statistic_pool(x, seq_length, *, block_b=8, t_tile=None):
    """x: (B, T, D) float, seq_length: (B,) int -> (mean (B, D), std (B, D))."""
    B, T, D = x.shape
    seq_length = seq_length.astype(jnp.int32)

    # Batch-block size: 8 rows (sublane-dense outputs); small B uses full extent.
    BB = min(block_b, B)
    pad_b = (-B) % BB
    if pad_b:
        x = jnp.pad(x, ((0, pad_b), (0, 0), (0, 0)))
        # Pad lengths with 1 so padded rows stay finite (they are sliced off).
        seq_length = jnp.pad(seq_length, (0, pad_b), constant_values=1)
    Bp = B + pad_b

    # Time tile: largest multiple of 8 keeping one input block <= ~6 MiB
    # (bounded VMEM even for long T; fits v7x's 64 MiB with double buffering).
    if t_tile is None:
        row_bytes = BB * D * x.dtype.itemsize
        if T * row_bytes <= _TARGET_BLOCK_BYTES:
            t_tile = T
        else:
            t_tile = max(8, (_TARGET_BLOCK_BYTES // row_bytes) // 8 * 8)
            t_tile = min(t_tile, T)
    if t_tile != T and t_tile % 8 != 0:
        raise ValueError("t_tile must equal T or be a multiple of 8")

    grid = (Bp // BB, pl.cdiv(T, t_tile))

    mean, std = pl.pallas_call(
        _stat_pool_kernel,
        grid_spec=pltpu.PrefetchScalarGridSpec(
            num_scalar_prefetch=1,                       # seq_length -> SMEM
            grid=grid,
            in_specs=[
                pl.BlockSpec((BB, t_tile, D), lambda b, k, seq: (b, k, 0)),
            ],
            out_specs=[
                pl.BlockSpec((BB, D), lambda b, k, seq: (b, 0)),
                pl.BlockSpec((BB, D), lambda b, k, seq: (b, 0)),
            ],
            scratch_shapes=[
                pltpu.VMEM((BB, D), jnp.float32),        # s1 accumulator
                pltpu.VMEM((BB, D), jnp.float32),        # s2 accumulator
            ],
        ),
        out_shape=(
            jax.ShapeDtypeStruct((Bp, D), x.dtype),
            jax.ShapeDtypeStruct((Bp, D), x.dtype),
        ),
        compiler_params=pltpu.CompilerParams(
            dimension_semantics=("parallel", "arbitrary"),
            vmem_limit_bytes=48 * 1024 * 1024,
        ),
    )(seq_length, x)

    if pad_b:
        mean = mean[:B]
        std = std[:B]
    return mean, std


def _reference(x, seq_length):
    """Pure-JAX reference mirroring the PyTorch forward exactly (two-pass)."""
    B, T, D = x.shape
    mask = (jnp.arange(T)[None, :] < seq_length[:, None]).astype(x.dtype)  # (B,T)
    mask3 = mask[:, :, None]
    xm = x * mask3
    x_sum = jnp.sum(xm, axis=1)
    x_mean = x_sum / seq_length[:, None].astype(x.dtype)
    x_cut = (xm - x_mean[:, None, :]) * mask3
    x_var = jnp.sum(jnp.square(x_cut), axis=1)
    x_std = jnp.sqrt(x_var / seq_length[:, None].astype(x.dtype) + EPSILON)
    return x_mean, x_std


if __name__ == "__main__":
    key = jax.random.PRNGKey(0)
    k1, k2, k3 = jax.random.split(key, 3)

    # Case 1: small shapes matching the module's typical usage (no padding,
    # single time tile).
    B, T, D = 2, 8, 32
    x = jax.random.normal(k1, (B, T, D), dtype=jnp.float32)
    seq = jnp.array([8, 5], dtype=jnp.int32)
    mean, std = statistic_pool(x, seq)
    mean, std = jax.block_until_ready((mean, std))
    ref_mean, ref_std = _reference(x, seq)
    assert mean.shape == (B, D) and std.shape == (B, D)
    assert jnp.allclose(mean, ref_mean, atol=1e-4, rtol=1e-4), "mean mismatch"
    assert jnp.allclose(std, ref_std, atol=1e-4, rtol=1e-4), "std mismatch"

    # Case 2: exercises batch padding (B=10 -> BB=8, padded to 16) and the
    # time-tile accumulator path (t_tile=16 over T=40, incl. a partial tail).
    B2, T2, D2 = 10, 40, 32
    x2 = jax.random.normal(k2, (B2, T2, D2), dtype=jnp.float32)
    seq2 = jax.random.randint(k3, (B2,), 1, T2 + 1).astype(jnp.int32)
    mean2, std2 = statistic_pool(x2, seq2, t_tile=16)
    mean2, std2 = jax.block_until_ready((mean2, std2))
    ref_mean2, ref_std2 = _reference(x2, seq2)
    assert jnp.allclose(mean2, ref_mean2, atol=1e-4, rtol=1e-4), "mean mismatch (tiled)"
    assert jnp.allclose(std2, ref_std2, atol=1e-4, rtol=1e-4), "std mismatch (tiled)"

    print("KERNEL_OK")
</pallas_src>

<mosaic_0001>
module attributes {stable_mosaic.version = 11 : i64} {
  func.func @_stat_pool_kernel(%arg0: i32, %arg1: i32, %arg2: memref<2xi32, #tpu.memory_space<smem>>, %arg3: memref<2x8x32xf32, #tpu.memory_space<vmem>>, %arg4: memref<2x32xf32, #tpu.memory_space<vmem>>, %arg5: memref<2x32xf32, #tpu.memory_space<vmem>>, %arg6: memref<2x32xf32, #tpu.memory_space<vmem>>, %arg7: memref<2x32xf32, #tpu.memory_space<vmem>>) attributes {dimension_semantics = [#tpu.dimension_semantics<parallel>, #tpu.dimension_semantics<arbitrary>], iteration_bounds = array<i64: 1, 1>, scalar_prefetch = 1 : i64, scratch_operands = 2 : i64, tpu.core_type = #tpu.core_type<tc>, window_params = [{transform_indices = @transform_0, window_bounds = array<i64: 2, 8, 32>}, {transform_indices = @transform_1, window_bounds = array<i64: 2, 32>}, {transform_indices = @transform_2, window_bounds = array<i64: 2, 32>}]} {
    %c0_i32 = arith.constant 0 : i32
    %0 = arith.cmpi eq, %arg1, %c0_i32 : i32
    %1 = arith.extui %0 : i1 to i32
    %c0_i32_0 = arith.constant 0 : i32
    %2 = arith.cmpi ne, %1, %c0_i32_0 : i32
    scf.if %2 {
      %cst_30 = arith.constant 0.000000e+00 : f32
      %52 = vector.broadcast %cst_30 : f32 to vector<2x32xf32>
      %c0_31 = arith.constant 0 : index
      %c0_32 = arith.constant 0 : index
      %53 = vector.load %arg6[%c0_31, %c0_32] : memref<2x32xf32, #tpu.memory_space<vmem>>, vector<2x32xf32>
      tpu.vector_store %arg6[%c0_31, %c0_32], %52 {strides = array<i32>} : memref<2x32xf32, #tpu.memory_space<vmem>>, vector<2x32xf32>,
      %cst_33 = arith.constant 0.000000e+00 : f32
      %54 = vector.broadcast %cst_33 : f32 to vector<2x32xf32>
      %c0_34 = arith.constant 0 : index
      %c0_35 = arith.constant 0 : index
      %55 = vector.load %arg7[%c0_34, %c0_35] : memref<2x32xf32, #tpu.memory_space<vmem>>, vector<2x32xf32>
      tpu.vector_store %arg7[%c0_34, %c0_35], %54 {strides = array<i32>} : memref<2x32xf32, #tpu.memory_space<vmem>>, vector<2x32xf32>,
    } else {
    }
    %3 = tpu.iota {dimensions = array<i32: 0>} : vector<8x32xi32>
    %c8_i32 = arith.constant 8 : i32
    %4 = arith.muli %arg1, %c8_i32 : i32
    %c2_i32 = arith.constant 2 : i32
    %5 = arith.muli %arg0, %c2_i32 : i32
    %c0_i32_1 = arith.constant 0 : i32
    %6 = arith.addi %5, %c0_i32_1 : i32
    %7 = arith.index_cast %6 : i32 to index
    %8 = memref.load %arg2[%7] : memref<2xi32, #tpu.memory_space<smem>>
    %9 = arith.subi %8, %4 : i32
    %10 = vector.broadcast %9 : i32 to vector<8x32xi32>
    %11 = arith.cmpi slt, %3, %10 : vector<8x32xi32>
    %c0 = arith.constant 0 : index
    %c0_2 = arith.constant 0 : index
    %c0_3 = arith.constant 0 : index
    %12 = vector.load %arg3[%c0, %c0_2, %c0_3] : memref<2x8x32xf32, #tpu.memory_space<vmem>>, vector<1x8x32xf32>
    %13 = vector.shape_cast %12 : vector<1x8x32xf32> to vector<8x32xf32>
    %cst = arith.constant 0.000000e+00 : f32
    %14 = vector.broadcast %cst : f32 to vector<8x32xf32>
    %15 = arith.select %11, %13, %14 : vector<8x32xi1>, vector<8x32xf32>
    %c0_4 = arith.constant 0 : index
    %c0_5 = arith.constant 0 : index
    %16 = vector.load %arg6[%c0_4, %c0_5] : memref<2x32xf32, #tpu.memory_space<vmem>>, vector<1x32xf32>
    %cst_6 = arith.constant dense<0.000000e+00> : vector<32xf32>
    %17 = vector.multi_reduction <add>, %15, %cst_6 [0] : vector<8x32xf32> to vector<32xf32>
    %18 = vector.shape_cast %17 : vector<32xf32> to vector<1x32xf32>
    %19 = arith.addf %16, %18 : vector<1x32xf32>
    %c0_7 = arith.constant 0 : index
    %c0_8 = arith.constant 0 : index
    %20 = vector.load %arg6[%c0_7, %c0_8] : memref<2x32xf32, #tpu.memory_space<vmem>>, vector<1x32xf32>
    tpu.vector_store %arg6[%c0_7, %c0_8], %19 {strides = array<i32>} : memref<2x32xf32, #tpu.memory_space<vmem>>, vector<1x32xf32>,
    %c0_9 = arith.constant 0 : index
    %c0_10 = arith.constant 0 : index
    %21 = vector.load %arg7[%c0_9, %c0_10] : memref<2x32xf32, #tpu.memory_space<vmem>>, vector<1x32xf32>
    %22 = arith.mulf %15, %15 : vector<8x32xf32>
    %cst_11 = arith.constant dense<0.000000e+00> : vector<32xf32>
    %23 = vector.multi_reduction <add>, %22, %cst_11 [0] : vector<8x32xf32> to vector<32xf32>
    %24 = vector.shape_cast %23 : vector<32xf32> to vector<1x32xf32>
    %25 = arith.addf %21, %24 : vector<1x32xf32>
    %c0_12 = arith.constant 0 : index
    %c0_13 = arith.constant 0 : index
    %26 = vector.load %arg7[%c0_12, %c0_13] : memref<2x32xf32, #tpu.memory_space<vmem>>, vector<1x32xf32>
    tpu.vector_store %arg7[%c0_12, %c0_13], %25 {strides = array<i32>} : memref<2x32xf32, #tpu.memory_space<vmem>>, vector<1x32xf32>,
    %c2_i32_14 = arith.constant 2 : i32
    %27 = arith.muli %arg0, %c2_i32_14 : i32
    %c1_i32 = arith.constant 1 : i32
    %28 = arith.addi %27, %c1_i32 : i32
    %29 = arith.index_cast %28 : i32 to index
    %30 = memref.load %arg2[%29] : memref<2xi32, #tpu.memory_space<smem>>
    %31 = arith.subi %30, %4 : i32
    %32 = vector.broadcast %31 : i32 to vector<8x32xi32>
    %33 = arith.cmpi slt, %3, %32 : vector<8x32xi32>
    %c1 = arith.constant 1 : index
    %c0_15 = arith.constant 0 : index
    %c0_16 = arith.constant 0 : index
    %34 = vector.load %arg3[%c1, %c0_15, %c0_16] : memref<2x8x32xf32, #tpu.memory_space<vmem>>, vector<1x8x32xf32>
    %35 = vector.shape_cast %34 : vector<1x8x32xf32> to vector<8x32xf32>
    %cst_17 = arith.constant 0.000000e+00 : f32
    %36 = vector.broadcast %cst_17 : f32 to vector<8x32xf32>
    %37 = arith.select %33, %35, %36 : vector<8x32xi1>, vector<8x32xf32>
    %c1_18 = arith.constant 1 : index
    %c0_19 = arith.constant 0 : index
    %38 = vector.load %arg6[%c1_18, %c0_19] : memref<2x32xf32, #tpu.memory_space<vmem>>, vector<1x32xf32>
    %cst_20 = arith.constant dense<0.000000e+00> : vector<32xf32>
    %39 = vector.multi_reduction <add>, %37, %cst_20 [0] : vector<8x32xf32> to vector<32xf32>
    %40 = vector.shape_cast %39 : vector<32xf32> to vector<1x32xf32>
    %41 = arith.addf %38, %40 : vector<1x32xf32>
    %c1_21 = arith.constant 1 : index
    %c0_22 = arith.constant 0 : index
    %42 = vector.load %arg6[%c1_21, %c0_22] : memref<2x32xf32, #tpu.memory_space<vmem>>, vector<1x32xf32>
    tpu.vector_store %arg6[%c1_21, %c0_22], %41 {strides = array<i32>} : memref<2x32xf32, #tpu.memory_space<vmem>>, vector<1x32xf32>,
    %c1_23 = arith.constant 1 : index
    %c0_24 = arith.constant 0 : index
    %43 = vector.load %arg7[%c1_23, %c0_24] : memref<2x32xf32, #tpu.memory_space<vmem>>, vector<1x32xf32>
    %44 = arith.mulf %37, %37 : vector<8x32xf32>
    %cst_25 = arith.constant dense<0.000000e+00> : vector<32xf32>
    %45 = vector.multi_reduction <add>, %44, %cst_25 [0] : vector<8x32xf32> to vector<32xf32>
    %46 = vector.shape_cast %45 : vector<32xf32> to vector<1x32xf32>
    %47 = arith.addf %43, %46 : vector<1x32xf32>
    %c1_26 = arith.constant 1 : index
    %c0_27 = arith.constant 0 : index
    %48 = vector.load %arg7[%c1_26, %c0_27] : memref<2x32xf32, #tpu.memory_space<vmem>>, vector<1x32xf32>
    tpu.vector_store %arg7[%c1_26, %c0_27], %47 {strides = array<i32>} : memref<2x32xf32, #tpu.memory_space<vmem>>, vector<1x32xf32>,
    %c0_i32_28 = arith.constant 0 : i32
    %49 = arith.cmpi eq, %arg1, %c0_i32_28 : i32
    %50 = arith.extui %49 : i1 to i32
    %c0_i32_29 = arith.constant 0 : i32
    %51 = arith.cmpi ne, %50, %c0_i32_29 : i32
    scf.if %51 {
      %c2_i32_30 = arith.constant 2 : i32
      %52 = arith.muli %arg0, %c2_i32_30 : i32
      %c0_i32_31 = arith.constant 0 : i32
      %53 = arith.addi %52, %c0_i32_31 : i32
      %54 = arith.index_cast %53 : i32 to index
      %55 = memref.load %arg2[%54] : memref<2xi32, #tpu.memory_space<smem>>
      %56 = arith.sitofp %55 : i32 to f32
      %c0_32 = arith.constant 0 : index
      %c0_33 = arith.constant 0 : index
      %57 = vector.load %arg6[%c0_32, %c0_33] : memref<2x32xf32, #tpu.memory_space<vmem>>, vector<1x32xf32>
      %c0_34 = arith.constant 0 : index
      %c0_35 = arith.constant 0 : index
      %58 = vector.load %arg7[%c0_34, %c0_35] : memref<2x32xf32, #tpu.memory_space<vmem>>, vector<1x32xf32>
      %59 = vector.broadcast %56 : f32 to vector<1x32xf32>
      %60 = arith.divf %57, %59 : vector<1x32xf32>
      %61 = vector.broadcast %56 : f32 to vector<1x32xf32>
      %62 = arith.divf %58, %61 : vector<1x32xf32>
      %63 = arith.mulf %60, %60 : vector<1x32xf32>
      %64 = arith.subf %62, %63 : vector<1x32xf32>
      %cst_36 = arith.constant 0.000000e+00 : f32
      %65 = vector.broadcast %cst_36 : f32 to vector<1x32xf32>
      %66 = arith.maximumf %64, %65 : vector<1x32xf32>
      %cst_37 = arith.constant 9.99999974E-6 : f32
      %67 = vector.broadcast %cst_37 : f32 to vector<1x32xf32>
      %68 = arith.addf %66, %67 : vector<1x32xf32>
      %69 = math.sqrt %68 : vector<1x32xf32>
      %c0_38 = arith.constant 0 : index
      %c0_39 = arith.constant 0 : index
      %70 = vector.load %arg4[%c0_38, %c0_39] : memref<2x32xf32, #tpu.memory_space<vmem>>, vector<1x32xf32>
      tpu.vector_store %arg4[%c0_38, %c0_39], %60 {strides = array<i32>} : memref<2x32xf32, #tpu.memory_space<vmem>>, vector<1x32xf32>,
      %c0_40 = arith.constant 0 : index
      %c0_41 = arith.constant 0 : index
      %71 = vector.load %arg5[%c0_40, %c0_41] : memref<2x32xf32, #tpu.memory_space<vmem>>, vector<1x32xf32>
      tpu.vector_store %arg5[%c0_40, %c0_41], %69 {strides = array<i32>} : memref<2x32xf32, #tpu.memory_space<vmem>>, vector<1x32xf32>,
      %c2_i32_42 = arith.constant 2 : i32
      %72 = arith.muli %arg0, %c2_i32_42 : i32
      %c1_i32_43 = arith.constant 1 : i32
      %73 = arith.addi %72, %c1_i32_43 : i32
      %74 = arith.index_cast %73 : i32 to index
      %75 = memref.load %arg2[%74] : memref<2xi32, #tpu.memory_space<smem>>
      %76 = arith.sitofp %75 : i32 to f32
      %c1_44 = arith.constant 1 : index
      %c0_45 = arith.constant 0 : index
      %77 = vector.load %arg6[%c1_44, %c0_45] : memref<2x32xf32, #tpu.memory_space<vmem>>, vector<1x32xf32>
      %c1_46 = arith.constant 1 : index
      %c0_47 = arith.constant 0 : index
      %78 = vector.load %arg7[%c1_46, %c0_47] : memref<2x32xf32, #tpu.memory_space<vmem>>, vector<1x32xf32>
      %79 = vector.broadcast %76 : f32 to vector<1x32xf32>
      %80 = arith.divf %77, %79 : vector<1x32xf32>
      %81 = vector.broadcast %76 : f32 to vector<1x32xf32>
      %82 = arith.divf %78, %81 : vector<1x32xf32>
      %83 = arith.mulf %80, %80 : vector<1x32xf32>
      %84 = arith.subf %82, %83 : vector<1x32xf32>
      %cst_48 = arith.constant 0.000000e+00 : f32
      %85 = vector.broadcast %cst_48 : f32 to vector<1x32xf32>
      %86 = arith.maximumf %84, %85 : vector<1x32xf32>
      %cst_49 = arith.constant 9.99999974E-6 : f32
      %87 = vector.broadcast %cst_49 : f32 to vector<1x32xf32>
      %88 = arith.addf %86, %87 : vector<1x32xf32>
      %89 = math.sqrt %88 : vector<1x32xf32>
      %c1_50 = arith.constant 1 : index
      %c0_51 = arith.constant 0 : index
      %90 = vector.load %arg4[%c1_50, %c0_51] : memref<2x32xf32, #tpu.memory_space<vmem>>, vector<1x32xf32>
      tpu.vector_store %arg4[%c1_50, %c0_51], %80 {strides = array<i32>} : memref<2x32xf32, #tpu.memory_space<vmem>>, vector<1x32xf32>,
      %c1_52 = arith.constant 1 : index
      %c0_53 = arith.constant 0 : index
      %91 = vector.load %arg5[%c1_52, %c0_53] : memref<2x32xf32, #tpu.memory_space<vmem>>, vector<1x32xf32>
      tpu.vector_store %arg5[%c1_52, %c0_53], %89 {strides = array<i32>} : memref<2x32xf32, #tpu.memory_space<vmem>>, vector<1x32xf32>,
    } else {
    }
    return
  }
  func.func @transform_0(%arg0: i32, %arg1: i32, %arg2: memref<2xi32, #tpu.memory_space<smem>>) -> (i32, i32, i32) {
    %c0_i32 = arith.constant 0 : i32
    %c0_i32_0 = arith.constant 0 : i32
    return %arg0, %arg1, %c0_i32 : i32, i32, i32
  }
  func.func @transform_1(%arg0: i32, %arg1: i32, %arg2: memref<2xi32, #tpu.memory_space<smem>>) -> (i32, i32) {
    %c0_i32 = arith.constant 0 : i32
    %c0_i32_0 = arith.constant 0 : i32
    return %arg0, %c0_i32 : i32, i32
  }
  func.func @transform_2(%arg0: i32, %arg1: i32, %arg2: memref<2xi32, #tpu.memory_space<smem>>) -> (i32, i32) {
    %c0_i32 = arith.constant 0 : i32
    %c0_i32_0 = arith.constant 0 : i32
    return %arg0, %c0_i32 : i32, i32
  }
}

</mosaic_0001>

<bundles_post_ra>
// kernel: tpu_custom_call.1
= control target key start
LH: loop header
LB: loop body
LE: loop exit
PB: predicated region body
PF: predicated region fallthrough
CT: control target
= control target key end

     0   :  { %s362_s0 = inlined_call_operand.hbm [shape: s32[2], index: 0, kind: input, shape index: {}]   ;;  %s363_s1 = inlined_call_operand.hbm [shape: f32[2,8,32], index: 1, kind: input, shape index: {}]   ;;  %s364_s2 = inlined_call_operand.hbm [shape: f32[2,32], index: 2, kind: output, shape index: {0}]   ;;  %s365_s3 = inlined_call_operand.hbm [shape: f32[2,32], index: 3, kind: output, shape index: {1}]  }
   0x1   :  { %s191_s14 = scalar_lea.hbm %s362_s0, 16 }
   0x2   :  { %p192_p0 = scmp.ne.s32.totalorder %s362_s0, %s191_s14  ;;  %p195_p1 = scmp.lt.u32.totalorder %s191_s14, %s362_s0 }
   0x4   :  { %p197_p2 = pnand %p195_p1, %p192_p0 }
   0x6   :  { %200 = shalt.err (!%p197_p2)  }
   0x7   :  { %s275_s19 = smov [#allocation5]  }
   0x8   :  { %10 = dma.hbm_to_smem %s362_s0, 16, %s275_s19, [#allocation4] }
   0x9   :  { %267 = dma.done.wait [#allocation4], 16 }
   0xa   :  { %268 = vsyncadd [#allocation4], 4294967280 }
   0xb   :  { %12 = sfence }
   0xc   :  { %13 = vsyncpa [#allocation7], 0 }
   0xd   :  { %14 = vsyncpa [#allocation8], 0 }
   0xe   :  { %15 = vsyncpa [#allocation11], 0  ;;  %s276_s22 = smov [#allocation6]   ;;  %s201_s26 = scalar_lea.hbm %s363_s1, 256 }
   0xf   :  { %s21_s23 = sshll.u32 %s276_s22, 4  ;;  %p202_p3 = scmp.ne.s32.totalorder %s363_s1, %s201_s26  ;;  %s22_s23 = int_to_ptr.vmem [resolvable:$true] %s21_s23 }
  0x10   :  { %p205_p4 = scmp.lt.u32.totalorder %s201_s26, %s363_s1 }
  0x12   :  { %p207_p5 = pnand %p205_p4, %p202_p3 }
  0x14   :  { %210 = shalt.err (!%p207_p5)
}
  0x15   :  { %s211_s0 = scalar_lea.vmem %s22_s23, 256  ;;  %p216_p7 = scmp.lt.s32.totalorder %s22_s23, %s22_s23 }
  0x16   :  { %p212_p6 = scmp.ne.s32.totalorder %s22_s23, %s211_s0  ;;  %p217_p8 = scmp.lt.s32.totalorder %s211_s0, %s211_s0 }
  0x18   :  { %p218_p9 = por %p217_p8, %p216_p7 }
  0x1a   :  { %p219_p10 = pnand %p218_p9, %p212_p6 }
  0x1c   :  { %222 = shalt.err (!%p219_p10)
}
  0x1d   :  { %s277_s4 = smov 128   ;;  %s278_s5 = smov 8  }
  0x1e   :  { %27 = dma.hbm_to_vmem [thread:$0]  %s363_s1, 256, %s22_s23, [#allocation7], %s277_s4, %s277_s4, %s278_s5  }
  0x1f   :  { %269 = dma.done.wait [#allocation7], 256  }
  0x20   :  { %270 = vsyncadd [#allocation7], 4294967040  ;;  %vm35_vm0 = vcmask 254976   ;;  %v38_v0 = vlaneseq  ;;  %v279_v1 = vmov 0.0   ;;  %s42_s8 = sld [smem:[#allocation5]]  ;;  %s326_s9 = sld [smem:[#allocation5 + $0x1]] }
  0x21   :  { %36 = vst.msk [vmem:[#allocation2] sm:$0x3] %vm35_vm0, %v279_v1  ;;  %37 = vst.msk [vmem:[#allocation3] sm:$0x3] %vm35_vm0, %v279_v1  ;;  %v46_v4 = vld [vmem:[#allocation6] sm:$0xff]  ;;  %vm49_vm1 = vcmask 261120  }
  0x22   :  { %v39_v2 = vshrl.u32 %v38_v0, 7  ;;  %v77_v6 = vld [vmem:[#allocation6 + $0x8] sm:$0xff]  ;;  %vm58_vm4 = vcmask 253952   ;;  %s280_s11 = smov [#allocation9]  }
  0x23   :  { %s151_s12 = sshll.u32 %s280_s11, 4  ;;  %s152_s12 = int_to_ptr.vmem [resolvable:$true] %s151_s12 }
  0x24   :  { %s223_s13 = scalar_lea.vmem %s152_s12, 32  ;;  %p228_p12 = scmp.lt.s32.totalorder %s152_s12, %s152_s12 }
  0x25   :  { %p224_p11 = scmp.ne.s32.totalorder %s152_s12, %s223_s13  ;;  %p229_p13 = scmp.lt.s32.totalorder %s223_s13, %s223_s13 }
  0x26   :  { %v44_v3 = vstv %s42_s8  ;;  %v74_v5 = vstv %s326_s9  ;;  %s104_s1 = scvt.s32.f32 %s42_s8  ;;  %s125_s10 = scvt.s32.f32 %s326_s9 }
  0x27   :  { %vm45_vm2 = vcmp.lt.s32.totalorder %v39_v2, %v44_v3  ;;  %vm75_vm3 = vcmp.lt.s32.totalorder %v39_v2, %v74_v5  ;;  %p230_p0 = por %p229_p13, %p228_p12 }
  0x28   :  { %v47_v7 = vsel %vm45_vm2, %v46_v4, 0.0  ;;  %v78_v8 = vsel %vm75_vm3, %v77_v6, 0.0  ;;  %v107_v21 = vstv %s104_s1  ;;  %v128_v26 = vstv %s125_s10  ;;  %v48_v35 = vld [vmem:[#allocation2] sm:$0x1]  ;;  %v79_v36 = vld [vmem:[#allocation2 + $0x1] sm:$0x1] }
  0x29   :  { %v50_v9 = vsel %vm49_vm1, %v47_v7, 0.0  ;;  %v80_v10 = vsel %vm49_vm1, %v78_v8, 0.0  ;;  %v61_v11 = vmul.f32 %v47_v7, %v47_v7  ;;  %v90_v12 = vmul.f32 %v78_v8, %v78_v8  ;;  %v60_v41 = vld [vmem:[#allocation3] sm:$0x1]  ;;  %v89_v42 = vld [vmem:[#allocation3 + $0x1] sm:$0x1]  ;;  %p231_p1 = pnand %p230_p0, %p224_p11 }
  0x2a   :  { %v51_v13 = vrot.slane %v50_v9, 4  ;;  %v81_v14 = vrot.slane %v80_v10, 4  ;;  %183 = vrcp.f32 %v107_v21 }
  0x2b   :  { %v62_v15 = vsel %vm49_vm1, %v61_v11, 0.0  ;;  %v91_v16 = vsel %vm49_vm1, %v90_v12, 0.0  ;;  %185 = vrcp.f32 %v128_v26 }
  0x2c   :  { %v52_v17 = vadd.f32 %v51_v13, %v50_v9  ;;  %v82_v18 = vadd.f32 %v81_v14, %v80_v10  ;;  %v63_v19 = vrot.slane %v62_v15, 4  ;;  %v92_v20 = vrot.slane %v91_v16, 4 }
  0x2e   :  { %v53_v22 = vrot.slane %v52_v17, 2  ;;  %v83_v23 = vrot.slane %v82_v18, 2  ;;  %v64_v24 = vadd.f32 %v63_v19, %v62_v15  ;;  %v93_v25 = vadd.f32 %v92_v20, %v91_v16 }
  0x30   :  { %v54_v27 = vadd.f32 %v53_v22, %v52_v17  ;;  %v84_v28 = vadd.f32 %v83_v23, %v82_v18  ;;  %v65_v29 = vrot.slane %v64_v24, 2  ;;  %v94_v30 = vrot.slane %v93_v25, 2 }
  0x32   :  { %v55_v31 = vrot.slane %v54_v27, 1  ;;  %v85_v32 = vrot.slane %v84_v28, 1  ;;  %v66_v33 = vadd.f32 %v65_v29, %v64_v24  ;;  %v95_v34 = vadd.f32 %v94_v30, %v93_v25 }
  0x34   :  { %v56_v37 = vadd.f32 %v55_v31, %v54_v27  ;;  %v86_v38 = vadd.f32 %v85_v32, %v84_v28  ;;  %v67_v39 = vrot.slane %v66_v33, 1  ;;  %v96_v40 = vrot.slane %v95_v34, 1  ;;  %v184_v49 = vpop.eup %183 }
  0x35   :  { %v186_v50 = vpop.eup %185 }
  0x36   :  { %v57_v43 = vadd.f32 %v56_v37, %v48_v35  ;;  %v87_v44 = vadd.f32 %v86_v38, %v79_v36  ;;  %v68_v45 = vadd.f32 %v67_v39, %v66_v33  ;;  %v97_v46 = vadd.f32 %v96_v40, %v95_v34 }
  0x38   :  { %59 = vst.msk [vmem:[#allocation2] sm:$0x1] %vm58_vm4, %v57_v43  ;;  %88 = vst.msk [vmem:[#allocation2 + $0x1] sm:$0x1] %vm58_vm4, %v87_v44  ;;  %v69_v47 = vadd.f32 %v68_v45, %v60_v41  ;;  %v98_v48 = vadd.f32 %v97_v46, %v89_v42 }
  0x3a   :  { %70 = vst.msk [vmem:[#allocation3] sm:$0x1] %vm58_vm4, %v69_v47  ;;  %99 = vst.msk [vmem:[#allocation3 + $0x1] sm:$0x1] %vm58_vm4, %v98_v48 }
  0x3f   :  { %v105_v51 = vld [vmem:[#allocation2] sm:$0x1]  ;;  %v126_v52 = vld [vmem:[#allocation2 + $0x1] sm:$0x1] }
  0x40   :  { %v109_v53 = vmul.f32 %v184_v49, %v105_v51  ;;  %v130_v54 = vmul.f32 %v186_v50, %v126_v52 }
  0x41   :  { %v106_v55 = vld [vmem:[#allocation3] sm:$0x1]  ;;  %v127_v56 = vld [vmem:[#allocation3 + $0x1] sm:$0x1] }
  0x42   :  { %v110_v57 = vmul.f32 %v184_v49, %v106_v55  ;;  %v111_v58 = vmul.f32 %v109_v53, %v109_v53  ;;  %122 = vst.msk [vmem:[#allocation9] sm:$0x1] %vm58_vm4, %v109_v53  ;;  %v131_v59 = vmul.f32 %v186_v50, %v127_v56  ;;  %v132_v60 = vmul.f32 %v130_v54, %v130_v54 }
  0x43   :  { %143 = vst.msk [vmem:[#allocation9 + $0x1] sm:$0x1] %vm58_vm4, %v130_v54 }
  0x44   :  { %234 = shalt.err (!%p231_p1)
}
  0x45   :  { %s235_s16 = scalar_lea.hbm %s364_s2, 32 }
  0x46   :  { %p236_p2 = scmp.ne.s32.totalorder %s364_s2, %s235_s16  ;;  %p239_p3 = scmp.lt.u32.totalorder %s235_s16, %s364_s2 }
  0x48   :  { %p241_p4 = pnand %p239_p3, %p236_p2 }
  0x4a   :  { %244 = shalt.err (!%p241_p4)
}
  0x4b   :  { %154 = dma.vmem_to_hbm [thread:$0]  %s152_s12, 32, %s364_s2, [#allocation8]   ;;  %v112_v61 = vsub.f32 %v110_v57, %v111_v58  ;;  %v133_v62 = vsub.f32 %v131_v59, %v132_v60 }
  0x4c   :  { %s281_s23 = smov [#allocation10]  }
  0x4d   :  { %v113_v63 = vmax.f32 %v112_v61, 0.0  ;;  %v134_v0 = vmax.f32 %v133_v62, 0.0  ;;  %s161_s24 = sshll.u32 %s281_s23, 4  ;;  %s162_s24 = int_to_ptr.vmem [resolvable:$true] %s161_s24 }
  0x4e   :  { %s245_s2 = scalar_lea.vmem %s162_s24, 32  ;;  %p250_p6 = scmp.lt.s32.totalorder %s162_s24, %s162_s24 }
  0x4f   :  { %v114_v1 = vadd.f32 1e-05, %v113_v63  ;;  %v135_v2 = vadd.f32 1e-05, %v134_v0  ;;  %p246_p5 = scmp.ne.s32.totalorder %s162_s24, %s245_s2  ;;  %p251_p7 = scmp.lt.s32.totalorder %s245_s2, %s245_s2 }
  0x51   :  { %187 = vrsqrt.f32 %v114_v1  ;;  %vm117_vm5 = vcmp.eq.f32.partialorder %v114_v1, inf  ;;  %v120_v6 = vand.u32 2147483648, %v114_v1  ;;  %vm119_vm6 = vcmp.eq.f32.partialorder %v114_v1, 0.0  ;;  %p252_p8 = por %p251_p7, %p250_p6 }
  0x52   :  { %189 = vrsqrt.f32 %v135_v2  ;;  %vm138_vm7 = vcmp.eq.f32.partialorder %v135_v2, inf  ;;  %v141_v9 = vand.u32 2147483648, %v135_v2  ;;  %vm140_vm8 = vcmp.eq.f32.partialorder %v135_v2, 0.0 }
  0x53   :  { %p253_p9 = pnand %p252_p8, %p246_p5 }
  0x5b   :  { %v188_v3 = vpop.eup %187 }
  0x5c   :  { %v190_v4 = vpop.eup %189  ;;  %v116_v5 = vmul.f32 %v188_v3, %v114_v1 }
  0x5d   :  { %v137_v7 = vmul.f32 %v190_v4, %v135_v2 }
  0x5e   :  { %v118_v8 = vsel %vm117_vm5, %v114_v1, %v116_v5 }
  0x5f   :  { %v121_v10 = vsel %vm119_vm6, %v120_v6, %v118_v8  ;;  %v139_v11 = vsel %vm138_vm7, %v135_v2, %v137_v7 }
  0x60   :  { %123 = vst.msk [vmem:[#allocation10] sm:$0x1] %vm58_vm4, %v121_v10  ;;  %v142_v12 = vsel %vm140_vm8, %v141_v9, %v139_v11 }
  0x61   :  { %144 = vst.msk [vmem:[#allocation10 + $0x1] sm:$0x1] %vm58_vm4, %v142_v12 }
  0x62   :  { %256 = shalt.err (!%p253_p9)
}
  0x63   :  { %s257_s27 = scalar_lea.hbm %s365_s3, 32 }
  0x64   :  { %p258_p10 = scmp.ne.s32.totalorder %s365_s3, %s257_s27  ;;  %p261_p11 = scmp.lt.u32.totalorder %s257_s27, %s365_s3 }
  0x66   :  { %p263_p12 = pnand %p261_p11, %p258_p10 }
  0x68   :  { %266 = shalt.err (!%p263_p12)
}
  0x69   :  { %164 = dma.vmem_to_hbm [thread:$0]  %s162_s24, 32, %s365_s3, [#allocation11]  }
  0x6a   :  { %271 = dma.done.wait [#allocation8], 32  }
  0x6b   :  { %272 = vsyncadd [#allocation8], 4294967264 }
  0x6c   :  { %273 = dma.done.wait [#allocation11], 32  }
  0x6d   :  { %274 = vsyncadd [#allocation11], 4294967264 }
  0x6e   :  { %171 = vsyncpa [#allocation7], 1 }
  0x6f   :  { %172 = vsyncpa [#allocation8], 1 }
  0x70   :  { %173 = vsyncpa [#allocation11], 1 }

</bundles_post_ra>
